<compile_context>
chip_gen: v7x
topology: tpu7x:2x2x1
jax: 0.10.0
libtpu: 0.0.40
codegen_flags: <defaults>
</compile_context>

<pallas_src>
import jax
import jax.numpy as jnp
from jax.experimental import pallas as pl
from jax.experimental.pallas import tpu as pltpu


# ---------------------------------------------------------------------------
# Fused kernel: (TB,784)@(784,128)+b1 -> ReLU -> @(128,128) -> ReLU -> @(128,10)
#               -> LogSoftmax
# ---------------------------------------------------------------------------
def fused_kernel(x_ref, wh_ref, b1_ref, w2_ref, w3_ref, out_ref):
    # x_ref: (TB, 784) f32    wh_ref: (784, 128) bf16   b1_ref: (1, 128) f32
    # w2_ref: (128, 128) bf16 (cols 60..127 zero)       w3_ref: (128, 10) bf16
    x = x_ref[...].astype(jnp.bfloat16)                       # in-kernel cast (VPU, hidden)
    h1 = jnp.dot(x, wh_ref[...], preferred_element_type=jnp.float32)
    h1 = jnp.maximum(h1 + b1_ref[...], 0.0)                   # f1 + f2
    h2 = jnp.maximum(
        jnp.dot(h1.astype(jnp.bfloat16), w2_ref[...],
                preferred_element_type=jnp.float32), 0.0)      # f3 + f4
    logits = jnp.dot(h2.astype(jnp.bfloat16), w3_ref[...],
                     preferred_element_type=jnp.float32)       # f5
    # f6: numerically-stable LogSoftmax along dim=1 (exactly 10 logits)
    m = jnp.max(logits, axis=-1, keepdims=True)
    z = logits - m
    lse = jnp.log(jnp.sum(jnp.exp(z), axis=-1, keepdims=True))
    out_ref[...] = z - lse


def _round_up(n, m):
    return ((n + m - 1) // m) * m


def _choose_tb(B, tb):
    """Batch tile: multiple of 8 (sublane), <= B unless it equals B exactly."""
    tb = max(8, _round_up(int(tb), 8))
    if B > tb:
        return tb
    if B >= 512:
        # Split a large-but-smaller-than-tb batch into ~2 tiles so both
        # TensorCores get work under dimension_semantics=("parallel",).
        return _round_up(pl.cdiv(B, 2), 8)
    return B                      # single block equal to the full batch dim


def conv2d_then_linear_53(x, params, *, tb=1024):
    """x: (B, 1, 28, 28) float32 (NCHW, like the PyTorch module)."""
    wh, b1, w2, w3 = params
    B = x.shape[0]
    x2 = x.reshape(B, 28 * 28)          # stays f32; cast happens in-kernel

    TB = _choose_tb(B, tb)
    grid = pl.cdiv(B, TB)               # last block may be partial (masked)

    flops = 2 * B * (784 * 128 + 128 * 128 + 128 * 10)
    bytes_accessed = (
        B * 784 * 4                               # x (f32)
        + 784 * 128 * 2                           # Wh (bf16, resident)
        + 128 * 4 + 128 * 128 * 2 + 128 * 10 * 2  # b1 (f32), W2, W3 (bf16)
        + B * 10 * 4                              # output (f32)
    )

    out = pl.pallas_call(
        fused_kernel,
        out_shape=jax.ShapeDtypeStruct((B, 10), jnp.float32),
        grid_spec=pltpu.PrefetchScalarGridSpec(
            num_scalar_prefetch=0,
            grid=(grid,),
            in_specs=[
                pl.BlockSpec((TB, 784), lambda i: (i, 0)),    # activations: tiled
                pl.BlockSpec((784, 128), lambda i: (0, 0)),   # Wh: VMEM-resident
                pl.BlockSpec((1, 128), lambda i: (0, 0)),     # b1: resident
                pl.BlockSpec((128, 128), lambda i: (0, 0)),   # W2: resident
                pl.BlockSpec((128, 10), lambda i: (0, 0)),    # W3: resident
            ],
            out_specs=pl.BlockSpec((TB, 10), lambda i: (i, 0)),
        ),
        compiler_params=pltpu.CompilerParams(
            dimension_semantics=("parallel",),   # megacore sharding on v7x
        ),
        cost_estimate=pl.CostEstimate(
            flops=flops, transcendentals=11 * B, bytes_accessed=bytes_accessed
        ),
    )(x2, wh, b1, w2, w3)
    return out


# ---------------------------------------------------------------------------
# Parameter generation (torch layouts) and offline weight folding
# ---------------------------------------------------------------------------
def init_params(key):
    """Synthetic params in the PyTorch layouts of the original module."""
    k0, k1, k2, k3, k4 = jax.random.split(key, 5)

    def uni(k, shape, fan_in):
        bound = 1.0 / jnp.sqrt(jnp.float32(fan_in))
        return jax.random.uniform(k, shape, jnp.float32, -bound, bound)

    return dict(
        wc=uni(k0, (15, 1, 6, 6), 36),       # f0: Conv2d(1,15,6,6,bias=False)
        w1=uni(k1, (128, 7935), 7935),       # f1: Linear(7935,128) weight
        b1=uni(k2, (128,), 7935),            # f1: bias
        w2=uni(k3, (60, 128), 128),          # f3: Linear(128,60,bias=False)
        w3=uni(k4, (10, 60), 60),            # f5: Linear(60,10,bias=False)
    )


def fold_params(raw):
    """Fold conv weight into W1: Wh[v*28+u, j] = sum_{c,p,q} wc[c,p,q]*W1[c,v-p,u-q,j].

    Matches PyTorch's C-major flatten of the (15,23,23) conv output with a
    stride-1 VALID 6x6 convolution.
    """
    wc = raw["wc"][:, 0]                                   # (15, 6, 6)
    w1r = raw["w1"].T.reshape(15, 23, 23, 128)             # [c, r, s, j]
    wh = jnp.zeros((28, 28, 128), jnp.float32)
    for p in range(6):
        for q in range(6):
            contrib = jnp.einsum("c,crsj->rsj", wc[:, p, q], w1r)   # (23,23,128)
            wh = wh.at[p:p + 23, q:q + 23, :].add(contrib)
    wh = wh.reshape(784, 128).astype(jnp.bfloat16)         # dominant GEMM weight

    b1 = raw["b1"].reshape(1, 128)                         # f32
    w2 = jnp.pad(raw["w2"].T, ((0, 0), (0, 68))).astype(jnp.bfloat16)  # (128,128)
    w3 = jnp.pad(raw["w3"].T, ((0, 68), (0, 0))).astype(jnp.bfloat16)  # (128,10)
    return (wh, b1, w2, w3)


# ---------------------------------------------------------------------------
# Pure-JAX reference of the *unfolded* module (for correctness checking)
# ---------------------------------------------------------------------------
def reference_forward(x, raw):
    B = x.shape[0]
    y = jax.lax.conv_general_dilated(
        x.reshape(B, 1, 28, 28), raw["wc"], window_strides=(1, 1),
        padding="VALID", dimension_numbers=("NCHW", "OIHW", "NCHW"),
    )                                                      # (B, 15, 23, 23)
    h = y.reshape(B, 7935) @ raw["w1"].T + raw["b1"]
    h = jnp.maximum(h, 0.0)
    h = jnp.maximum(h @ raw["w2"].T, 0.0)
    logits = h @ raw["w3"].T
    return jax.nn.log_softmax(logits, axis=1)


if __name__ == "__main__":
    key = jax.random.PRNGKey(0)
    kx, kp, kx2 = jax.random.split(key, 3)

    raw = init_params(kp)
    params = fold_params(raw)
    fwd = jax.jit(conv2d_then_linear_53)

    # Small batch (single full-batch block): check against the unfolded reference.
    B = 2
    x = jax.random.normal(kx, (B, 1, 28, 28), jnp.float32)
    out = jax.block_until_ready(fwd(x, params))
    ref = reference_forward(x, raw)
    assert out.shape == (B, 10)
    assert jnp.allclose(jnp.sum(jnp.exp(out), axis=1), 1.0, atol=1e-3)
    assert jnp.allclose(out, ref, atol=2e-2, rtol=2e-2), (
        f"max abs diff {jnp.max(jnp.abs(out - ref))}")

    # Larger batch with a small tile to exercise the multi-step grid and the
    # masked partial last block (200 = 3*64 + 8).
    B2 = 200
    x2 = jax.random.normal(kx2, (B2, 1, 28, 28), jnp.float32)
    fwd_tiled = jax.jit(lambda xv, pv: conv2d_then_linear_53(xv, pv, tb=64))
    out2 = jax.block_until_ready(fwd_tiled(x2, params))
    ref2 = reference_forward(x2, raw)
    assert out2.shape == (B2, 10)
    assert jnp.allclose(jnp.sum(jnp.exp(out2), axis=1), 1.0, atol=1e-3)
    assert jnp.allclose(out2, ref2, atol=2e-2, rtol=2e-2), (
        f"max abs diff {jnp.max(jnp.abs(out2 - ref2))}")

    print("KERNEL_OK")
</pallas_src>

<mosaic_0001>
module attributes {stable_mosaic.version = 11 : i64} {
  func.func @fused_kernel(%arg0: i32, %arg1: memref<2x784xf32, #tpu.memory_space<vmem>>, %arg2: memref<784x128xbf16, #tpu.memory_space<vmem>>, %arg3: memref<1x128xf32, #tpu.memory_space<vmem>>, %arg4: memref<128x128xbf16, #tpu.memory_space<vmem>>, %arg5: memref<128x10xbf16, #tpu.memory_space<vmem>>, %arg6: memref<2x10xf32, #tpu.memory_space<vmem>>) attributes {dimension_semantics = [#tpu.dimension_semantics<parallel>], iteration_bounds = array<i64: 1>, scalar_prefetch = 0 : i64, scratch_operands = 0 : i64, tpu.core_type = #tpu.core_type<tc>, window_params = [{transform_indices = @transform_0, window_bounds = array<i64: 2, 784>}, {pipeline_mode = #tpu.pipeline_mode<synchronous>, transform_indices = @transform_1, window_bounds = array<i64: 784, 128>}, {pipeline_mode = #tpu.pipeline_mode<synchronous>, transform_indices = @transform_2, window_bounds = array<i64: 1, 128>}, {pipeline_mode = #tpu.pipeline_mode<synchronous>, transform_indices = @transform_3, window_bounds = array<i64: 128, 128>}, {pipeline_mode = #tpu.pipeline_mode<synchronous>, transform_indices = @transform_4, window_bounds = array<i64: 128, 10>}, {transform_indices = @transform_5, window_bounds = array<i64: 2, 10>}]} {
    %c0 = arith.constant 0 : index
    %c0_0 = arith.constant 0 : index
    %0 = vector.load %arg1[%c0, %c0_0] : memref<2x784xf32, #tpu.memory_space<vmem>>, vector<2x784xf32>
    %1 = arith.truncf %0 : vector<2x784xf32> to vector<2x784xbf16>
    %c0_1 = arith.constant 0 : index
    %c0_2 = arith.constant 0 : index
    %2 = vector.load %arg2[%c0_1, %c0_2] : memref<784x128xbf16, #tpu.memory_space<vmem>>, vector<784x128xbf16>
    %cst = arith.constant dense<0.000000e+00> : vector<2x128xf32>
    %3 = tpu.matmul %1, %2, %cst {dimension_numbers = #tpu.dot_dimension_numbers<[1], [0], [0], [1], [0, 0, 1, 1], [], []>} : vector<2x784xbf16>, vector<784x128xbf16>, vector<2x128xf32> -> vector<2x128xf32>
    %c0_3 = arith.constant 0 : index
    %c0_4 = arith.constant 0 : index
    %4 = vector.load %arg3[%c0_3, %c0_4] : memref<1x128xf32, #tpu.memory_space<vmem>>, vector<1x128xf32>
    %5 = vector.broadcast %4 : vector<1x128xf32> to vector<2x128xf32>
    %6 = arith.addf %3, %5 : vector<2x128xf32>
    %cst_5 = arith.constant 0.000000e+00 : f32
    %7 = vector.broadcast %cst_5 : f32 to vector<2x128xf32>
    %8 = arith.maximumf %6, %7 : vector<2x128xf32>
    %9 = arith.truncf %8 : vector<2x128xf32> to vector<2x128xbf16>
    %c0_6 = arith.constant 0 : index
    %c0_7 = arith.constant 0 : index
    %10 = vector.load %arg4[%c0_6, %c0_7] : memref<128x128xbf16, #tpu.memory_space<vmem>>, vector<128x128xbf16>
    %cst_8 = arith.constant dense<0.000000e+00> : vector<2x128xf32>
    %11 = tpu.matmul %9, %10, %cst_8 {dimension_numbers = #tpu.dot_dimension_numbers<[1], [0], [0], [1], [0, 0, 1, 1], [], []>} : vector<2x128xbf16>, vector<128x128xbf16>, vector<2x128xf32> -> vector<2x128xf32>
    %cst_9 = arith.constant 0.000000e+00 : f32
    %12 = vector.broadcast %cst_9 : f32 to vector<2x128xf32>
    %13 = arith.maximumf %11, %12 : vector<2x128xf32>
    %14 = arith.truncf %13 : vector<2x128xf32> to vector<2x128xbf16>
    %c0_10 = arith.constant 0 : index
    %c0_11 = arith.constant 0 : index
    %15 = vector.load %arg5[%c0_10, %c0_11] : memref<128x10xbf16, #tpu.memory_space<vmem>>, vector<128x10xbf16>
    %cst_12 = arith.constant dense<0.000000e+00> : vector<2x10xf32>
    %16 = tpu.matmul %14, %15, %cst_12 {dimension_numbers = #tpu.dot_dimension_numbers<[1], [0], [0], [1], [0, 0, 1, 1], [], []>} : vector<2x128xbf16>, vector<128x10xbf16>, vector<2x10xf32> -> vector<2x10xf32>
    %cst_13 = arith.constant dense<0xFF800000> : vector<2xf32>
    %17 = vector.multi_reduction <maximumf>, %16, %cst_13 [1] : vector<2x10xf32> to vector<2xf32>
    %18 = vector.shape_cast %17 : vector<2xf32> to vector<2x1xf32>
    %19 = vector.broadcast %18 : vector<2x1xf32> to vector<2x10xf32>
    %20 = arith.subf %16, %19 : vector<2x10xf32>
    %21 = math.exp %20 : vector<2x10xf32>
    %cst_14 = arith.constant dense<0.000000e+00> : vector<2xf32>
    %22 = vector.multi_reduction <add>, %21, %cst_14 [1] : vector<2x10xf32> to vector<2xf32>
    %23 = vector.shape_cast %22 : vector<2xf32> to vector<2x1xf32>
    %24 = math.log %23 : vector<2x1xf32>
    %25 = vector.broadcast %24 : vector<2x1xf32> to vector<2x10xf32>
    %26 = arith.subf %20, %25 : vector<2x10xf32>
    %c0_15 = arith.constant 0 : index
    %c0_16 = arith.constant 0 : index
    %27 = vector.load %arg6[%c0_15, %c0_16] : memref<2x10xf32, #tpu.memory_space<vmem>>, vector<2x10xf32>
    tpu.vector_store %arg6[%c0_15, %c0_16], %26 {strides = array<i32>} : memref<2x10xf32, #tpu.memory_space<vmem>>, vector<2x10xf32>,
    return
  }
  func.func @transform_0(%arg0: i32) -> (i32, i32) {
    %c0_i32 = arith.constant 0 : i32
    %c0_i32_0 = arith.constant 0 : i32
    return %arg0, %c0_i32 : i32, i32
  }
  func.func @transform_1(%arg0: i32) -> (i32, i32) {
    %c0_i32 = arith.constant 0 : i32
    %c0_i32_0 = arith.constant 0 : i32
    %c0_i32_1 = arith.constant 0 : i32
    return %c0_i32, %c0_i32_0 : i32, i32
  }
  func.func @transform_2(%arg0: i32) -> (i32, i32) {
    %c0_i32 = arith.constant 0 : i32
    %c0_i32_0 = arith.constant 0 : i32
    %c0_i32_1 = arith.constant 0 : i32
    return %c0_i32, %c0_i32_0 : i32, i32
  }
  func.func @transform_3(%arg0: i32) -> (i32, i32) {
    %c0_i32 = arith.constant 0 : i32
    %c0_i32_0 = arith.constant 0 : i32
    %c0_i32_1 = arith.constant 0 : i32
    return %c0_i32, %c0_i32_0 : i32, i32
  }
  func.func @transform_4(%arg0: i32) -> (i32, i32) {
    %c0_i32 = arith.constant 0 : i32
    %c0_i32_0 = arith.constant 0 : i32
    %c0_i32_1 = arith.constant 0 : i32
    return %c0_i32, %c0_i32_0 : i32, i32
  }
  func.func @transform_5(%arg0: i32) -> (i32, i32) {
    %c0_i32 = arith.constant 0 : i32
    %c0_i32_0 = arith.constant 0 : i32
    return %arg0, %c0_i32 : i32, i32
  }
}

</mosaic_0001>

<bundles_post_ra>
// kernel: conv2d_then_linear_53.1
= control target key start
LH: loop header
LB: loop body
LE: loop exit
PB: predicated region body
PF: predicated region fallthrough
CT: control target
= control target key end

     0   :  { %10 = vsyncpa [#allocation3], 0  ;;  %s1361_s0 = inlined_call_operand.vmem [shape: f32[2,784], index: 0, kind: input, shape index: {}]   ;;  %s1362_s1 = inlined_call_operand.hbm [shape: bf16[784,128], index: 1, kind: input, shape index: {}]   ;;  %s1363_s2 = inlined_call_operand.vmem [shape: f32[1,128], index: 2, kind: input, shape index: {}]   ;;  %s1364_s3 = inlined_call_operand.vmem [shape: bf16[128,128], index: 3, kind: input, shape index: {}]   ;;  %s1365_s4 = inlined_call_operand.vmem [shape: bf16[128,10], index: 4, kind: input, shape index: {}]   ;;  %s1366_s5 = inlined_call_operand.hbm [shape: f32[2,10], index: 5, kind: output, shape index: {}]  }
   0x1   :  { %11 = vsyncpa [#allocation4], 0  ;;  %s1216_s18 = smov [#allocation2]   ;;  %s1168_s22 = scalar_lea.hbm %s1362_s1, 6272 }
   0x2   :  { %s19_s19 = sshll.u32 %s1216_s18, 4  ;;  %p1169_p0 = scmp.ne.s32.totalorder %s1362_s1, %s1168_s22  ;;  %s20_s19 = int_to_ptr.vmem [resolvable:$true] %s19_s19 }
   0x3   :  { %p1172_p1 = scmp.lt.u32.totalorder %s1168_s22, %s1362_s1 }
   0x5   :  { %p1174_p2 = pnand %p1172_p1, %p1169_p0 }
   0x7   :  { %1177 = shalt.err (!%p1174_p2)
}
   0x8   :  { %s1178_s27 = scalar_lea.vmem %s20_s19, 6272  ;;  %p1183_p4 = scmp.lt.s32.totalorder %s20_s19, %s20_s19 }
   0x9   :  { %p1179_p3 = scmp.ne.s32.totalorder %s20_s19, %s1178_s27  ;;  %p1184_p5 = scmp.lt.s32.totalorder %s1178_s27, %s1178_s27 }
   0xb   :  { %p1185_p6 = por %p1184_p5, %p1183_p4 }
   0xd   :  { %p1186_p7 = pnand %p1185_p6, %p1179_p3 }
   0xf   :  { %1189 = shalt.err (!%p1186_p7)
}
  0x10   :  { %s1217_s28 = smov 64   ;;  %s1218_s29 = smov 4  }
  0x11   :  { %25 = dma.hbm_to_vmem [thread:$0]  %s1362_s1, 6272, %s20_s19, [#allocation3], %s1217_s28, %s1217_s28, %s1218_s29  }
  0x12   :  { %1212 = dma.done.wait [#allocation3], 6272  }
  0x13   :  { %1213 = vsyncadd [#allocation3], 4294961024  ;;  %v1097_v0 = vld [vmem:[#allocation2 + $0x40] sm:$0xff]   ;;  %v1101_v4 = vld [vmem:[#allocation2 + $0x48] sm:$0xff]   ;;  %v1219_v21 = vmov 1983009808   ;;  %v44_v23 = vlaneseq }
  0x14   :  { %v1098_v1 = vld [vmem:[#allocation2] sm:$0xff]   ;;  %958 = vmatprep.subr.bf16.mxu0 %v1097_v0  ;;  %v1102_v5 = vld [vmem:[#allocation2 + $0x8] sm:$0xff]   ;;  %v1105_v8 = vld [vmem:[#allocation2 + $0x50] sm:$0xff]   ;;  %v42_v22 = vunpack.c.l.s4 %v1219_v21  ;;  %v1220_v45 = vmov 0.0   ;;  %vm1221_vm0 = vmmov 0   ;;  %vm486_vm1 = vcmask 130048  }
  0x15   :  { %v1099_v2 = vld [vmem:[#allocation2 + $0xc0] sm:$0xff]   ;;  %959 = vmatpush3.bf16.msra.mxu0 %v1098_v1  ;;  %v1103_v6 = vld [vmem:[#allocation2 + $0xc8] sm:$0xff]   ;;  %v1106_v9 = vld [vmem:[#allocation2 + $0x10] sm:$0xff]   ;;  %v45_v29 = vshrl.u32 %v44_v23, 7  ;;  %vm862_vm2 = vcmask 74752  }
  0x16   :  { %v1100_v3 = vld [vmem:[#allocation2 + $0x80] sm:$0xff]   ;;  %980 = vmatprep.subr.bf16.mxu1 %v1099_v2  ;;  %960 = vmatprep.subr.bf16.mxu0 %v1101_v4  ;;  %v1104_v7 = vld [vmem:[#allocation2 + $0x88] sm:$0xff]   ;;  %v1107_v10 = vld [vmem:[#allocation2 + $0xd0] sm:$0xff]   ;;  %v43_v28 = vunpack.c.0.s8 %v42_v22 }
  0x17   :  { %981 = vmatpush3.bf16.msra.mxu1 %v1100_v3  ;;  %v1108_v11 = vld [vmem:[#allocation2 + $0x90] sm:$0xff]   ;;  %v1109_v12 = vld [vmem:[#allocation2 + $0x58] sm:$0xff]   ;;  %v1113_v16 = vld [vmem:[#allocation2 + $0x60] sm:$0xff]  }
  0x18   :  { %982 = vmatprep.subr.bf16.mxu1 %v1103_v6  ;;  %v1110_v13 = vld [vmem:[#allocation2 + $0x18] sm:$0xff]   ;;  %v1114_v17 = vld [vmem:[#allocation2 + $0x20] sm:$0xff]   ;;  %v1117_v20 = vld [vmem:[#allocation2 + $0x68] sm:$0xff]   ;;  %v46_v34 = vsub.s32 %v43_v28, %v45_v29 }
  0x19   :  { %961 = vmatpush3.bf16.msra.mxu0 %v1102_v5  ;;  %v1111_v14 = vld [vmem:[#allocation2 + $0xd8] sm:$0xff]   ;;  %v1115_v18 = vld [vmem:[#allocation2 + $0xe0] sm:$0xff]   ;;  %v1118_v24 = vld [vmem:[#allocation2 + $0x28] sm:$0xff]  }
  0x1a   :  { %962 = vmatprep.subr.bf16.mxu0 %v1105_v8  ;;  %v1112_v15 = vld [vmem:[#allocation2 + $0x98] sm:$0xff]   ;;  %v1116_v19 = vld [vmem:[#allocation2 + $0xa0] sm:$0xff]   ;;  %v1119_v25 = vld [vmem:[#allocation2 + $0xe8] sm:$0xff]  }
  0x1b   :  { %983 = vmatpush3.bf16.msra.mxu1 %v1104_v7  ;;  %v1120_v26 = vld [vmem:[#allocation2 + $0xa8] sm:$0xff]   ;;  %v1121_v27 = vld [vmem:[#allocation2 + $0x70] sm:$0xff]   ;;  %v1125_v33 = vld [vmem:[#allocation2 + $0x78] sm:$0xff]  }
  0x1c   :  { %984 = vmatprep.subr.bf16.mxu1 %v1107_v10  ;;  %v1122_v30 = vld [vmem:[#allocation2 + $0x30] sm:$0xff]   ;;  %v1126_v35 = vld [vmem:[#allocation2 + $0x38] sm:$0xff]   ;;  %v36_v37 = vld [vmem:[%s1361_s0] sm:$0xff] }
  0x1d   :  { %963 = vmatpush3.bf16.msra.mxu0 %v1106_v9  ;;  %v1123_v31 = vld [vmem:[#allocation2 + $0xf0] sm:$0xff]   ;;  %v1127_v36 = vld [vmem:[#allocation2 + $0xf8] sm:$0xff]   ;;  %v47_v38 = vrot.slane %v36_v37, %v46_v34  ;;  %v40_v40 = vcombine.high %v36_v37, %v36_v37  ;;  %v1129_v41 = vld [vmem:[#allocation2 + $0x140] sm:$0xff]  }
  0x1e   :  { %964 = vmatprep.subr.bf16.mxu0 %v1109_v12  ;;  %v1124_v32 = vld [vmem:[#allocation2 + $0xb0] sm:$0xff]   ;;  %v1128_v39 = vld [vmem:[#allocation2 + $0xb8] sm:$0xff]   ;;  %v1131_v48 = vld [vmem:[#allocation2 + $0x100] sm:$0xff]  }
  0x1f   :  { %985 = vmatpush3.bf16.msra.mxu1 %v1108_v11  ;;  %v55_v42 = vcombine.high %v47_v38, %v47_v38  ;;  %v54_v43 = vrot.slane %v40_v40, %v46_v34  ;;  %v80_v44 = vpack.c.bf16 %v47_v38, %v47_v38  ;;  %v1132_v50 = vld [vmem:[#allocation2 + $0x148] sm:$0xff]   ;;  %v1134_v53 = vld [vmem:[#allocation2 + $0x150] sm:$0xff]   ;;  %v1136_v55 = vld [vmem:[#allocation2 + $0x158] sm:$0xff]  }
  0x20   :  { %986 = vmatprep.subr.bf16.mxu1 %v1111_v14  ;;  %v1133_v52 = vld [vmem:[#allocation2 + $0x108] sm:$0xff]   ;;  %v1135_v54 = vld [vmem:[#allocation2 + $0x110] sm:$0xff]   ;;  %v1137_v56 = vld [vmem:[#allocation2 + $0x118] sm:$0xff]  }
  0x21   :  { %965 = vmatpush3.bf16.msra.mxu0 %v1110_v13  ;;  %v81_v46 = vpack.c.bf16 %v55_v42, %v55_v42  ;;  %v56_v47 = vcombine.high %v54_v43, %v54_v43  ;;  %v82_v49 = vpack.c.bf16 %v54_v43, %v54_v43  ;;  %v1138_v57 = vld [vmem:[#allocation2 + $0x160] sm:$0xff]   ;;  %v37_v59 = vld [vmem:[%s1361_s0 + $0x8] sm:$0x3f]  ;;  %v1142_v5 = vld [vmem:[#allocation2 + $0x170] sm:$0xff]  }
  0x22   :  { %966 = vmatprep.subr.bf16.mxu0 %v1113_v16  ;;  %v1146_v58 = vld [vmem:[#allocation2 + $0x180] sm:$0xff]   ;;  %v57_v61 = vcombine.high %v37_v59, %v37_v59  ;;  %v64_v62 = vrot.slane %v37_v59, %v46_v34  ;;  %v1140_v63 = vld [vmem:[#allocation2 + $0x168] sm:$0xff]   ;;  %v1143_v6 = vld [vmem:[#allocation2 + $0x130] sm:$0xff]  }
  0x23   :  { %987 = vmatpush3.bf16.msra.mxu1 %v1112_v15  ;;  %522 = vmatprep.mubr.bf16.mxu0 %v81_v46  ;;  %v83_v51 = vpack.c.bf16 %v56_v47, %v56_v47  ;;  %v1139_v60 = vld [vmem:[#allocation2 + $0x120] sm:$0xff]   ;;  %v1141_v2 = vld [vmem:[#allocation2 + $0x128] sm:$0xff]   ;;  %v1144_v7 = vld [vmem:[#allocation2 + $0x178] sm:$0xff]  }
  0x24   :  { %988 = vmatprep.subr.bf16.mxu1 %v1115_v18  ;;  %v71_v0 = vrot.slane %v57_v61, %v46_v34  ;;  %v72_v1 = vcombine.high %v64_v62, %v64_v62  ;;  %v1145_v8 = vld [vmem:[#allocation2 + $0x138] sm:$0xff]   ;;  %v84_v9 = vpack.c.bf16 %v64_v62, %v64_v62  ;;  %v1148_v10 = vld [vmem:[%s1364_s3] sm:$0xff]   ;;  %v1149_v11 = vld [vmem:[%s1364_s3 + $0x8] sm:$0xff]  }
  0x25   :  { %967 = vmatpush3.bf16.msra.mxu0 %v1114_v17  ;;  %562 = vmatprep.mubr.bf16.mxu1 %v83_v51  ;;  %v1150_v12 = vld [vmem:[%s1364_s3 + $0x10] sm:$0xff]   ;;  %v1151_v13 = vld [vmem:[%s1364_s3 + $0x18] sm:$0xff]   ;;  %v1152_v14 = vld [vmem:[%s1364_s3 + $0x20] sm:$0xff]  }
  0x26   :  { %968 = vmatprep.subr.bf16.mxu0 %v1117_v20  ;;  %v85_v3 = vpack.c.bf16 %v72_v1, %v72_v1  ;;  %v86_v4 = vpack.c.bf16 %v71_v0, %v71_v0  ;;  %v1153_v15 = vld [vmem:[%s1364_s3 + $0x28] sm:$0xff]   ;;  %v1154_v16 = vld [vmem:[%s1364_s3 + $0x30] sm:$0xff]   ;;  %v1155_v17 = vld [vmem:[%s1364_s3 + $0x38] sm:$0xff]  }
  0x27   :  { %989 = vmatpush3.bf16.msra.mxu1 %v1116_v19  ;;  %v1156_v18 = vld [vmem:[%s1365_s4] sm:$0xff]   ;;  %v1157_v19 = vld [vmem:[%s1365_s4 + $0x8] sm:$0xff]   ;;  %v1158_v20 = vld [vmem:[%s1365_s4 + $0x10] sm:$0xff]  }
  0x28   :  { %990 = vmatprep.subr.bf16.mxu1 %v1119_v25  ;;  %v1159_v21 = vld [vmem:[%s1365_s4 + $0x18] sm:$0xff]   ;;  %v1160_v22 = vld [vmem:[%s1365_s4 + $0x20] sm:$0xff]   ;;  %v1161_v23 = vld [vmem:[%s1365_s4 + $0x28] sm:$0xff]  }
  0x29   :  { %969 = vmatpush3.bf16.msra.mxu0 %v1118_v24  ;;  %v1162_v24 = vld [vmem:[%s1365_s4 + $0x30] sm:$0xff]   ;;  %v1163_v51 = vld [vmem:[%s1365_s4 + $0x38] sm:$0xff]   ;;  %s1222_s4 = smov [#allocation5]  }
  0x2a   :  { %970 = vmatprep.subr.bf16.mxu0 %v1121_v27  ;;  %s882_s14 = sshll.u32 %s1222_s4, 4  ;;  %s883_s14 = int_to_ptr.vmem [resolvable:$true] %s882_s14 }
  0x2b   :  { %991 = vmatpush3.bf16.msra.mxu1 %v1120_v26  ;;  %v891_v26 = vld [vmem:[%s1363_s2] ss:$0 sm:$0xff]  ;;  %s1190_s15 = scalar_lea.vmem %s883_s14, 32  ;;  %p1195_p9 = scmp.lt.s32.totalorder %s883_s14, %s883_s14 }
  0x2c   :  { %992 = vmatprep.subr.bf16.mxu1 %v1123_v31  ;;  %p1191_p8 = scmp.ne.s32.totalorder %s883_s14, %s1190_s15  ;;  %p1196_p10 = scmp.lt.s32.totalorder %s1190_s15, %s1190_s15 }
  0x2d   :  { %971 = vmatpush3.bf16.msra.mxu0 %v1122_v30 }
  0x2e   :  { %972 = vmatprep.subr.bf16.mxu0 %v1125_v33  ;;  %p1197_p11 = por %p1196_p10, %p1195_p9 }
  0x2f   :  { %993 = vmatpush3.bf16.msra.mxu1 %v1124_v32 }
  0x30   :  { %994 = vmatprep.subr.bf16.mxu1 %v1127_v36  ;;  %p1198_p12 = pnand %p1197_p11, %p1191_p8 }
  0x31   :  { %973 = vmatpush3.bf16.msra.mxu0 %v1126_v35 }
  0x32   :  { %1002 = vmatprep.subr.bf16.mxu0 %v1129_v41 }
  0x33   :  { %995 = vmatpush3.bf16.msra.mxu1 %v1128_v39 }
  0x34   :  { %1044 = vmatprep.subr.bf16.mxu1 %v1220_v45  ;;  %523 = vmatmul.mubr.bf16.vlgmr.msra.gmra.mrb[0].mxu0 %v80_v44 }
  0x35   :  { %1003 = vmatpush3.bf16.msra.mxu0 %v1131_v48  ;;  %602 = vmatprep.mubr.bf16.mxu0 %v85_v3 }
  0x36   :  { %563 = vmatmul.mubr.bf16.vlgmr.msra.gmra.mrb[0].mxu1 %v82_v49  ;;  %1004 = vmatprep.subr.bf16.mxu0 %v1132_v50 }
  0x37   :  { %1046 = vmatprep.mubr.msk.bf16.mxu1 %vm1221_vm0, %v1220_v45  ;;  %1045 = vmatpush3.bf16.msra.mxu1 %v1146_v58 }
  0x38   :  { %1050 = vmatprep.subr.bf16.mxu1 %v1220_v45 }
  0x39   :  { %1005 = vmatpush3.bf16.msra.mxu0 %v1133_v52 }
  0x3a   :  { %1006 = vmatprep.subr.bf16.mxu0 %v1134_v53 }
  0x3d   :  { %1007 = vmatpush3.bf16.msra.mxu0 %v1135_v54 }
  0x3e   :  { %1008 = vmatprep.subr.bf16.mxu0 %v1136_v55  ;;  %1047 = vmatmul.mubr.msk.bf16.vlgmr.msra.gmra.mrb[4].mxu1 %vm486_vm1, %v86_v4 }
  0x3f   :  { %1066 = vmatprep.mubr.msk.bf16.mxu1 %vm1221_vm0, %v1220_v45  ;;  %1051 = vmatpush3.bf16.msra.mxu1 %v1148_v10 }
  0x40   :  { %1052 = vmatprep.subr.bf16.mxu1 %v1220_v45 }
  0x41   :  { %1009 = vmatpush3.bf16.msra.mxu0 %v1137_v56 }
  0x42   :  { %1010 = vmatprep.subr.bf16.mxu0 %v1138_v57 }
  0x43   :  { %1053 = vmatpush3.bf16.msra.mxu1 %v1149_v11 }
  0x44   :  { %1054 = vmatprep.subr.bf16.mxu1 %v1220_v45 }
  0x45   :  { %1011 = vmatpush3.bf16.msra.mxu0 %v1139_v60 }
  0x46   :  { %1012 = vmatprep.subr.bf16.mxu0 %v1140_v63 }
  0x47   :  { %1055 = vmatpush3.bf16.msra.mxu1 %v1150_v12 }
  0x48   :  { %1056 = vmatprep.subr.bf16.mxu1 %v1220_v45 }
  0x49   :  { %1013 = vmatpush3.bf16.msra.mxu0 %v1141_v2 }
  0x4a   :  { %1014 = vmatprep.subr.bf16.mxu0 %v1142_v5 }
  0x4b   :  { %1057 = vmatpush3.bf16.msra.mxu1 %v1151_v13 }
  0x4c   :  { %1058 = vmatprep.subr.bf16.mxu1 %v1220_v45 }
  0x4d   :  { %1015 = vmatpush3.bf16.msra.mxu0 %v1143_v6 }
  0x4e   :  { %1016 = vmatprep.subr.bf16.mxu0 %v1144_v7 }
  0x4f   :  { %1059 = vmatpush3.bf16.msra.mxu1 %v1152_v14 }
  0x50   :  { %1060 = vmatprep.subr.bf16.mxu1 %v1220_v45 }
  0x51   :  { %1017 = vmatpush3.bf16.msra.mxu0 %v1145_v8 }
  0x52   :  { %1070 = vmatprep.subr.bf16.mxu0 %v1220_v45 }
  0x53   :  { %1061 = vmatpush3.bf16.msra.mxu1 %v1153_v15 }
  0x54   :  { %603 = vmatmul.mubr.bf16.vlgmr.msra.gmra.mrb[4].mxu0 %v84_v9  ;;  %1062 = vmatprep.subr.bf16.mxu1 %v1220_v45 }
  0x55   :  { %1086 = vmatprep.mubr.msk.bf16.mxu0 %vm1221_vm0, %v1220_v45  ;;  %1071 = vmatpush3.bf16.msra.mxu0 %v1156_v18 }
  0x56   :  { %1072 = vmatprep.subr.bf16.mxu0 %v1220_v45 }
  0x57   :  { %1063 = vmatpush3.bf16.msra.mxu1 %v1154_v16 }
  0x58   :  { %1064 = vmatprep.subr.bf16.mxu1 %v1220_v45 }
  0x59   :  { %1073 = vmatpush3.bf16.msra.mxu0 %v1157_v19 }
  0x5a   :  { %1074 = vmatprep.subr.bf16.mxu0 %v1220_v45 }
  0x5b   :  { %1065 = vmatpush3.bf16.msra.mxu1 %v1155_v17 }
  0x5d   :  { %1075 = vmatpush3.bf16.msra.mxu0 %v1158_v20 }
  0x5e   :  { %1076 = vmatprep.subr.bf16.mxu0 %v1220_v45 }
  0x61   :  { %1077 = vmatpush3.bf16.msra.mxu0 %v1159_v21 }
  0x62   :  { %1078 = vmatprep.subr.bf16.mxu0 %v1220_v45 }
  0x65   :  { %1079 = vmatpush3.bf16.msra.mxu0 %v1160_v22 }
  0x66   :  { %1080 = vmatprep.subr.bf16.mxu0 %v1220_v45 }
  0x69   :  { %1081 = vmatpush3.bf16.msra.mxu0 %v1161_v23 }
  0x6a   :  { %1082 = vmatprep.subr.bf16.mxu0 %v1220_v45 }
  0x6d   :  { %1083 = vmatpush3.bf16.msra.mxu0 %v1162_v24 }
  0x6e   :  { %1084 = vmatprep.subr.bf16.mxu0 %v1220_v45 }
  0x71   :  { %1085 = vmatpush3.bf16.msra.mxu0 %v1163_v51 }
 0x107   :  { %v974_v25 = vpop.f32.mrb[0].mxu0 }
 0x108   :  { %v975_v27 = vpop.f32.mrb[1].mxu0 }
 0x109   :  { %v976_v28 = vadd.f32 %v975_v27, %v974_v25  ;;  %v977_v29 = vpop.f32.mrb[2].mxu0  ;;  %v996_v30 = vpop.f32.mrb[0].mxu1 }
 0x10a   :  { %v978_v31 = vpop.f32.mrb[3].mxu0  ;;  %v997_v32 = vpop.f32.mrb[1].mxu1 }
 0x10b   :  { %v525_v33 = vadd.f32 %v976_v28, %v891_v26  ;;  %v998_v34 = vadd.f32 %v997_v32, %v996_v30  ;;  %v999_v35 = vpop.f32.mrb[2].mxu1 }
 0x10c   :  { %v1000_v36 = vpop.f32.mrb[3].mxu1 }
 0x10d   :  { %v565_v37 = vadd.f32 %v998_v34, %v525_v33 }
 0x111   :  { %v644_v38 = vpop.f32.mrb[4].mxu1 }
 0x112   :  { %v1048_v39 = vpop.f32.mrb[5].mxu1 }
 0x113   :  { %v647_v40 = vpop.f32.mrb[6].mxu1 }
 0x114   :  { %v1049_v41 = vpop.f32.mrb[7].mxu1 }
 0x127   :  { %v1018_v42 = vpop.f32.mrb[4].mxu0 }
 0x128   :  { %v1019_v43 = vpop.f32.mrb[5].mxu0 }
 0x129   :  { %v1020_v44 = vadd.f32 %v1019_v43, %v1018_v42  ;;  %v1021_v45 = vpop.f32.mrb[6].mxu0 }
 0x12a   :  { %v1022_v46 = vpop.f32.mrb[7].mxu0 }
 0x12b   :  { %v605_v47 = vadd.f32 %v1020_v44, %v565_v37 }
 0x12d   :  { %v645_v48 = vadd.f32 %v644_v38, %v605_v47 }
 0x12f   :  { %v650_v49 = vmax.f32 %v645_v48, 0.0 }
 0x131   :  { %v651_v50 = vpack.c.bf16 %v650_v49, %v650_v49 }
 0x133   :  { %1067 = vmatmul.mubr.bf16.vlgmr.msra.gmra.mrb[8].mxu1 %v651_v50 }
 0x206   :  { %v750_v52 = vpop.f32.mrb[8].mxu1 }
 0x207   :  { %v756_v53 = vmax.f32 %v750_v52, 0.0  ;;  %v1068_v54 = vpop.f32.mrb[9].mxu1 }
 0x208   :  { %v753_v55 = vpop.f32.mrb[10].mxu1 }
 0x209   :  { %v757_v56 = vpack.c.bf16 %v756_v53, %v756_v53  ;;  %v1069_v57 = vpop.f32.mrb[11].mxu1 }
 0x20b   :  { %1087 = vmatmul.mubr.bf16.vlgmr.msra.gmra.mrb[8].mxu0 %v757_v56 }
 0x2de   :  { %v856_v58 = vpop.f32.mrb[8].mxu0 }
 0x2df   :  { %v1088_v59 = vpop.f32.mrb[9].mxu0  ;;  %v863_v60 = vsel %vm862_vm2, %v856_v58, -inf }
 0x2e0   :  { %864 = vmax.xlane.f32.xlu0 %v863_v60  ;;  %v859_v61 = vpop.f32.mrb[10].mxu0 }
 0x2e1   :  { %v1089_v62 = vpop.f32.mrb[11].mxu0 }
 0x36d   :  { %v865_v63 = vpop.xlane.xlu0 %864 }
 0x36e   :  { %v866_v0 = vsub.f32 %v856_v58, %v865_v63 }
 0x370   :  { %v867_v1 = vmul.f32 1.442695, %v866_v0 }
 0x372   :  { %1164 = vpow2.f32 %v867_v1 }
 0x37c   :  { %v1165_v2 = vpop.eup %1164 }
 0x37d   :  { %v869_v3 = vsel %vm862_vm2, %v1165_v2, 0.0 }
 0x37e   :  { %870 = vadd.xlane.f32.xlu0 %v869_v3 }
 0x40b   :  { %v871_v4 = vpop.xlane.xlu0 %870 }
 0x40c   :  { %1166 = vlog2.f32 %v871_v4 }
 0x416   :  { %v1167_v5 = vpop.eup %1166 }
 0x417   :  { %v873_v6 = vmul.f32 0.6931472, %v1167_v5 }
 0x419   :  { %v874_v7 = vsub.f32 %v866_v0, %v873_v6 }
 0x41b   :  { %875 = vst.msk [vmem:[#allocation5] sm:$0x3] %vm862_vm2, %v874_v7 }
 0x41c   :  { %1201 = shalt.err (!%p1198_p12)
}
 0x41d   :  { %s1202_s18 = scalar_lea.hbm %s1366_s5, 32 }
 0x41e   :  { %p1203_p13 = scmp.ne.s32.totalorder %s1366_s5, %s1202_s18  ;;  %p1206_p0 = scmp.lt.u32.totalorder %s1202_s18, %s1366_s5 }
 0x420   :  { %p1208_p1 = pnand %p1206_p0, %p1203_p13 }
 0x422   :  { %1211 = shalt.err (!%p1208_p1)
}
 0x423   :  { %885 = dma.vmem_to_hbm [thread:$0]  %s883_s14, 32, %s1366_s5, [#allocation4]  }
 0x424   :  { %1214 = dma.done.wait [#allocation4], 32  }
 0x425   :  { %1215 = vsyncadd [#allocation4], 4294967264 }
 0x426   :  { %889 = vsyncpa [#allocation3], 1 }
 0x427   :  { %890 = vsyncpa [#allocation4], 1 }

</bundles_post_ra>
